<compile_context>
chip_gen: v7x
topology: tpu7x:2x2x1
jax: 0.10.0
libtpu: 0.0.40
codegen_flags: <defaults>
</compile_context>

<pallas_src>
import numpy as np
import jax
import jax.numpy as jnp
from jax import lax
from jax.experimental import pallas as pl
from jax.experimental.pallas import tpu as pltpu


def _roi_weighted_sum_kernel(cb_ref, coords_ref, rc_ref, x_ref, s_ref, o_ref,
                             e_scr, inv_scr):
    """Grid step = (ROI chunk g, channel tile c).

    cb_ref:     (G,)           int32 SMEM  per-chunk image index (used by index_maps)
    coords_ref: (1, R, 4)      int32 VMEM  clamped [x1, y1, x2, y2] per ROI in chunk
    rc_ref:     (2, HW)        int32 VMEM  row / col index of each flat spatial pos
    x_ref:      (1, Ct, HW)    f32   VMEM  channel tile of the chunk's image features
    s_ref:      (1, 1, HW)     f32   VMEM  score map of the chunk's image
    o_ref:      (R, Ct)        f32         output tile (channels on lanes)
    e_scr:      (R, HW)        f32 scratch unnormalized softmax weights (per chunk)
    inv_scr:    (R, 1)         f32 scratch 1 / sum(weights)   (1.0 for empty boxes)
    """
    # Build the masked-softmax weights once per ROI chunk (first channel tile only).
    @pl.when(pl.program_id(1) == 0)
    def _():
        coords = coords_ref[0]                       # (R, 4) int32
        x1 = coords[:, 0:1]
        y1 = coords[:, 1:2]
        x2 = coords[:, 2:3]
        y2 = coords[:, 3:4]                          # (R, 1) each
        rc = rc_ref[...]                             # (2, HW)
        row = rc[0:1, :]                             # (1, HW)
        col = rc[1:2, :]
        inbox = jnp.logical_and(
            jnp.logical_and(row >= y1, row < y2),
            jnp.logical_and(col >= x1, col < x2))    # (R, HW)
        score = s_ref[0]                             # (1, HW)
        masked = jnp.where(inbox, score, jnp.float32(-1e30))
        m = jnp.max(masked, axis=1, keepdims=True)                    # (R, 1)
        e = jnp.where(inbox, jnp.exp(masked - m), jnp.float32(0.0))   # (R, HW)
        denom = jnp.sum(e, axis=1, keepdims=True)                     # (R, 1)
        # Degenerate / padded boxes have e == 0 everywhere -> result row is 0
        # regardless of the scale, so just guard the reciprocal.
        safe = jnp.where(denom > 0.0, denom, jnp.float32(1.0))
        e_scr[...] = e
        # approx=False keeps full f32 fidelity vs the PyTorch reference; switch to
        # approx=True (EUP vrcp) if a few ulps of drift are acceptable.
        inv_scr[...] = pl.reciprocal(safe, approx=False)

    # (R, HW) . (Ct, HW)^T on the MXU, then scale only R*Ct values (deferred norm).
    acc = lax.dot_general(
        e_scr[...], x_ref[0],
        dimension_numbers=(((1,), (1,)), ((), ())),
        preferred_element_type=jnp.float32,
        precision=lax.Precision.HIGHEST,   # full-f32 MXU passes (matches reference)
    )                                                                # (R, Ct)
    o_ref[...] = (acc * inv_scr[...]).astype(o_ref.dtype)


def roi_weighted_sum(x, rois, score_map, spatial_scale=1.0, rois_per_step=8):
    """x: (N,C,H,W) f32, rois: (B,5) f32, score_map: (N,1,H,W) f32 -> (B,C,1,1) f32."""
    N, C, H, W = x.shape
    B = rois.shape[0]
    HW = H * W

    # ROIs per grid step: multiple of 8 (sublane-aligned output block). For real
    # detector workloads use 64-128 to fill the MXU rows.
    R = max(8, (int(rois_per_step) + 7) // 8 * 8)

    # Channel tile: 128 when it divides C (MXU / lane friendly), else the full C.
    C_TILE = 128 if (C % 128 == 0) else C
    CT = C // C_TILE
    # TODO(synk): for very large H*W (e.g. FPN P2 at 200x272) also tile HW and set
    # pltpu.CompilerParams(vmem_limit_bytes=...) with headroom for v5e/v7x budgets.

    x_flat = x.reshape(N, C, HW)
    s_flat = score_map.reshape(N, 1, HW)

    # ---- box preprocessing (plain JAX glue) --------------------------------
    batch_id = rois[:, 0].astype(jnp.int32)
    coords = jnp.round(rois[:, 1:5] * jnp.float32(spatial_scale)).astype(jnp.int32)
    x1 = jnp.clip(coords[:, 0], 0, W)
    y1 = jnp.clip(coords[:, 1], 0, H)
    x2 = jnp.clip(coords[:, 2], 0, W)
    y2 = jnp.clip(coords[:, 3], 0, H)
    coords = jnp.stack([x1, y1, x2, y2], axis=1)                     # (B, 4) int32

    # ---- sort by image & pack into per-image chunks of R ROIs --------------
    order = jnp.argsort(batch_id, stable=True)                       # (B,)
    sb = batch_id[order]                                             # sorted batch ids
    sc = coords[order]                                               # sorted coords
    counts = jnp.sum(batch_id[None, :] == jnp.arange(N)[:, None], axis=1).astype(jnp.int32)
    chunks_per = (counts + R - 1) // R
    chunk_start = jnp.concatenate(
        [jnp.zeros((1,), jnp.int32), jnp.cumsum(chunks_per)[:-1]]).astype(jnp.int32)
    group_start = jnp.concatenate(
        [jnp.zeros((1,), jnp.int32), jnp.cumsum(counts)[:-1]]).astype(jnp.int32)
    G = B // R + N                       # static bound: sum_n ceil(c_n/R) <= B//R + N

    rank = jnp.arange(B, dtype=jnp.int32) - group_start[sb]          # rank within image
    chunk = chunk_start[sb] + rank // R                              # chunk per sorted ROI
    pos = rank % R
    slot = chunk * R + pos                                           # padded row index

    # Padded ROI table: untouched slots stay all-zero => degenerate => zero output.
    pad_coords = jnp.zeros((G * R, 4), jnp.int32).at[slot].set(sc).reshape(G, R, 4)
    chunk_batch = jnp.zeros((G,), jnp.int32).at[chunk].max(sb)       # (G,) image per chunk
    inv_slot = jnp.zeros((B,), jnp.int32).at[order].set(slot)        # orig ROI -> padded row

    # Flat row / col index of every spatial position (avoids in-kernel integer div).
    flat = jnp.arange(HW, dtype=jnp.int32)
    pos_rc = jnp.stack([flat // W, flat % W], axis=0)                # (2, HW) int32

    out_pad = pl.pallas_call(
        _roi_weighted_sum_kernel,
        out_shape=jax.ShapeDtypeStruct((G * R, C), x.dtype),
        grid_spec=pltpu.PrefetchScalarGridSpec(
            num_scalar_prefetch=1,
            grid=(G, CT),
            in_specs=[
                pl.BlockSpec((1, R, 4), lambda g, c, cb: (g, 0, 0)),           # boxes
                pl.BlockSpec((2, HW), lambda g, c, cb: (0, 0)),                # row/col
                pl.BlockSpec((1, C_TILE, HW), lambda g, c, cb: (cb[g], c, 0)), # features
                pl.BlockSpec((1, 1, HW), lambda g, c, cb: (cb[g], 0, 0)),      # scores
            ],
            out_specs=pl.BlockSpec((R, C_TILE), lambda g, c, cb: (g, c)),
            scratch_shapes=[
                pltpu.VMEM((R, HW), jnp.float32),   # unnormalized weights
                pltpu.VMEM((R, 1), jnp.float32),    # reciprocal of softmax denom
            ],
        ),
        compiler_params=pltpu.CompilerParams(
            dimension_semantics=("parallel", "arbitrary")),
    )(chunk_batch, pad_coords, pos_rc, x_flat, s_flat)

    out = out_pad[inv_slot]                                          # (B, C) lane-dense
    return out.reshape(B, C, 1, 1)


def ref_forward(x, rois, score_map, spatial_scale=1.0):
    """Pure numpy reference mirroring the PyTorch forward."""
    x = np.asarray(x)
    rois = np.asarray(rois)
    score_map = np.asarray(score_map)
    N, C, H, W = x.shape
    outs = []
    for roi in rois:
        b = int(roi[0])
        x1, y1, x2, y2 = (int(np.round(v * spatial_scale)) for v in roi[1:5])
        if x1 >= x2 or y1 >= y2:
            outs.append(np.zeros((C, 1, 1), np.float32))
            continue
        mask = np.zeros((H, W), np.float32)
        mask[y1:y2, x1:x2] = 1.0
        mask = mask * score_map[b, 0]
        mr = mask[y1:y2, x1:x2].reshape(-1)
        mr = np.exp(mr - mr.max())
        mr = mr / mr.sum()
        full = np.zeros((H, W), np.float32)
        full[y1:y2, x1:x2] = mr.reshape(y2 - y1, x2 - x1)
        feat = x[b] * full[None]
        outs.append(feat.sum(axis=(1, 2)).reshape(C, 1, 1))
    return np.stack(outs, axis=0)


if __name__ == "__main__":
    N, C, H, W = 2, 4, 16, 16
    key = jax.random.PRNGKey(0)
    k1, k2 = jax.random.split(key)
    x = jax.random.normal(k1, (N, C, H, W), dtype=jnp.float32)
    score_map = jax.random.normal(k2, (N, 1, H, W), dtype=jnp.float32)

    # Deterministic ROIs: [batch_idx, x1, y1, x2, y2]; one degenerate box included.
    rois = jnp.array(
        [
            [0.0, 1.2, 2.7, 10.4, 12.9],
            [1.0, 0.0, 0.0, 16.0, 16.0],
            [0.0, 5.0, 5.0, 5.0, 9.0],   # degenerate: x1 >= x2 -> zeros
            [1.0, 3.6, 7.2, 14.1, 15.8],
        ],
        dtype=jnp.float32,
    )

    out = roi_weighted_sum(x, rois, score_map, spatial_scale=1.0)
    out = jax.block_until_ready(out)

    ref = ref_forward(x, rois, score_map, spatial_scale=1.0)
    np.testing.assert_allclose(np.asarray(out), ref, rtol=1e-4, atol=1e-4)
    print("KERNEL_OK")
</pallas_src>

<mosaic_0001>
module attributes {stable_mosaic.version = 11 : i64} {
  func.func @_roi_weighted_sum_kernel(%arg0: i32, %arg1: i32, %arg2: memref<2xi32, #tpu.memory_space<smem>>, %arg3: memref<1x8x4xi32, #tpu.memory_space<vmem>>, %arg4: memref<2x256xi32, #tpu.memory_space<vmem>>, %arg5: memref<1x4x256xf32, #tpu.memory_space<vmem>>, %arg6: memref<1x1x256xf32, #tpu.memory_space<vmem>>, %arg7: memref<8x4xf32, #tpu.memory_space<vmem>>, %arg8: memref<8x256xf32, #tpu.memory_space<vmem>>, %arg9: memref<8x1xf32, #tpu.memory_space<vmem>>) attributes {dimension_semantics = [#tpu.dimension_semantics<parallel>, #tpu.dimension_semantics<arbitrary>], iteration_bounds = array<i64: 2, 1>, scalar_prefetch = 1 : i64, scratch_operands = 2 : i64, tpu.core_type = #tpu.core_type<tc>, window_params = [{transform_indices = @transform_0, window_bounds = array<i64: 1, 8, 4>}, {pipeline_mode = #tpu.pipeline_mode<synchronous>, transform_indices = @transform_1, window_bounds = array<i64: 2, 256>}, {transform_indices = @transform_2, window_bounds = array<i64: 1, 4, 256>}, {transform_indices = @transform_3, window_bounds = array<i64: 1, 1, 256>}, {transform_indices = @transform_4, window_bounds = array<i64: 8, 4>}]} {
    %c0_i32 = arith.constant 0 : i32
    %0 = arith.cmpi eq, %arg1, %c0_i32 : i32
    %1 = arith.extui %0 : i1 to i32
    %c0_i32_0 = arith.constant 0 : i32
    %2 = arith.cmpi ne, %1, %c0_i32_0 : i32
    scf.if %2 {
      %c0_9 = arith.constant 0 : index
      %c0_10 = arith.constant 0 : index
      %c0_11 = arith.constant 0 : index
      %11 = vector.load %arg3[%c0_9, %c0_10, %c0_11] : memref<1x8x4xi32, #tpu.memory_space<vmem>>, vector<1x8x4xi32>
      %12 = vector.shape_cast %11 : vector<1x8x4xi32> to vector<8x4xi32>
      %13 = vector.extract_strided_slice %12 {offsets = [0, 0], sizes = [8, 1], strides = [1, 1]} : vector<8x4xi32> to vector<8x1xi32>
      %14 = vector.extract_strided_slice %12 {offsets = [0, 1], sizes = [8, 1], strides = [1, 1]} : vector<8x4xi32> to vector<8x1xi32>
      %15 = vector.extract_strided_slice %12 {offsets = [0, 2], sizes = [8, 1], strides = [1, 1]} : vector<8x4xi32> to vector<8x1xi32>
      %16 = vector.extract_strided_slice %12 {offsets = [0, 3], sizes = [8, 1], strides = [1, 1]} : vector<8x4xi32> to vector<8x1xi32>
      %c0_12 = arith.constant 0 : index
      %c0_13 = arith.constant 0 : index
      %17 = vector.load %arg4[%c0_12, %c0_13] : memref<2x256xi32, #tpu.memory_space<vmem>>, vector<2x256xi32>
      %18 = vector.extract_strided_slice %17 {offsets = [0, 0], sizes = [1, 256], strides = [1, 1]} : vector<2x256xi32> to vector<1x256xi32>
      %19 = vector.extract_strided_slice %17 {offsets = [1, 0], sizes = [1, 256], strides = [1, 1]} : vector<2x256xi32> to vector<1x256xi32>
      %20 = vector.broadcast %18 : vector<1x256xi32> to vector<8x256xi32>
      %21 = vector.broadcast %14 : vector<8x1xi32> to vector<8x256xi32>
      %22 = arith.cmpi sge, %20, %21 : vector<8x256xi32>
      %23 = vector.broadcast %18 : vector<1x256xi32> to vector<8x256xi32>
      %24 = vector.broadcast %16 : vector<8x1xi32> to vector<8x256xi32>
      %25 = arith.cmpi slt, %23, %24 : vector<8x256xi32>
      %26 = arith.andi %22, %25 : vector<8x256xi1>
      %27 = vector.broadcast %19 : vector<1x256xi32> to vector<8x256xi32>
      %28 = vector.broadcast %13 : vector<8x1xi32> to vector<8x256xi32>
      %29 = arith.cmpi sge, %27, %28 : vector<8x256xi32>
      %30 = vector.broadcast %19 : vector<1x256xi32> to vector<8x256xi32>
      %31 = vector.broadcast %15 : vector<8x1xi32> to vector<8x256xi32>
      %32 = arith.cmpi slt, %30, %31 : vector<8x256xi32>
      %33 = arith.andi %29, %32 : vector<8x256xi1>
      %34 = arith.andi %26, %33 : vector<8x256xi1>
      %c0_14 = arith.constant 0 : index
      %c0_15 = arith.constant 0 : index
      %c0_16 = arith.constant 0 : index
      %35 = vector.load %arg6[%c0_14, %c0_15, %c0_16] : memref<1x1x256xf32, #tpu.memory_space<vmem>>, vector<1x1x256xf32>
      %36 = vector.shape_cast %35 : vector<1x1x256xf32> to vector<1x256xf32>
      %cst_17 = arith.constant -1.000000e+30 : f32
      %37 = vector.shape_cast %36 : vector<1x256xf32> to vector<1x256xf32>
      %38 = vector.broadcast %37 : vector<1x256xf32> to vector<8x256xf32>
      %39 = vector.broadcast %cst_17 : f32 to vector<8x256xf32>
      %40 = arith.select %34, %38, %39 : vector<8x256xi1>, vector<8x256xf32>
      %cst_18 = arith.constant dense<0xFF800000> : vector<8xf32>
      %41 = vector.multi_reduction <maximumf>, %40, %cst_18 [1] : vector<8x256xf32> to vector<8xf32>
      %42 = vector.shape_cast %41 : vector<8xf32> to vector<8x1xf32>
      %43 = vector.broadcast %42 : vector<8x1xf32> to vector<8x256xf32>
      %44 = arith.subf %40, %43 : vector<8x256xf32>
      %45 = math.exp %44 : vector<8x256xf32>
      %cst_19 = arith.constant 0.000000e+00 : f32
      %46 = vector.broadcast %cst_19 : f32 to vector<8x256xf32>
      %47 = arith.select %34, %45, %46 : vector<8x256xi1>, vector<8x256xf32>
      %cst_20 = arith.constant dense<0.000000e+00> : vector<8xf32>
      %48 = vector.multi_reduction <add>, %47, %cst_20 [1] : vector<8x256xf32> to vector<8xf32>
      %49 = vector.shape_cast %48 : vector<8xf32> to vector<8x1xf32>
      %cst_21 = arith.constant 0.000000e+00 : f32
      %50 = vector.broadcast %cst_21 : f32 to vector<8x1xf32>
      %51 = arith.cmpf ogt, %49, %50 : vector<8x1xf32>
      %cst_22 = arith.constant 1.000000e+00 : f32
      %52 = vector.broadcast %cst_22 : f32 to vector<8x1xf32>
      %53 = arith.select %51, %49, %52 : vector<8x1xi1>, vector<8x1xf32>
      %c0_23 = arith.constant 0 : index
      %c0_24 = arith.constant 0 : index
      %54 = vector.load %arg8[%c0_23, %c0_24] : memref<8x256xf32, #tpu.memory_space<vmem>>, vector<8x256xf32>
      tpu.vector_store %arg8[%c0_23, %c0_24], %47 {strides = array<i32>} : memref<8x256xf32, #tpu.memory_space<vmem>>, vector<8x256xf32>,
      %55 = tpu.reciprocal %53 : vector<8x1xf32> -> vector<8x1xf32>
      %c0_25 = arith.constant 0 : index
      %c0_26 = arith.constant 0 : index
      %56 = vector.load %arg9[%c0_25, %c0_26] : memref<8x1xf32, #tpu.memory_space<vmem>>, vector<8x1xf32>
      tpu.vector_store %arg9[%c0_25, %c0_26], %55 {strides = array<i32>} : memref<8x1xf32, #tpu.memory_space<vmem>>, vector<8x1xf32>,
    } else {
    }
    %c0 = arith.constant 0 : index
    %c0_1 = arith.constant 0 : index
    %3 = vector.load %arg8[%c0, %c0_1] : memref<8x256xf32, #tpu.memory_space<vmem>>, vector<8x256xf32>
    %c0_2 = arith.constant 0 : index
    %c0_3 = arith.constant 0 : index
    %c0_4 = arith.constant 0 : index
    %4 = vector.load %arg5[%c0_2, %c0_3, %c0_4] : memref<1x4x256xf32, #tpu.memory_space<vmem>>, vector<1x4x256xf32>
    %5 = vector.shape_cast %4 : vector<1x4x256xf32> to vector<4x256xf32>
    %cst = arith.constant dense<0.000000e+00> : vector<8x4xf32>
    %6 = tpu.matmul %3, %5, %cst {dimension_numbers = #tpu.dot_dimension_numbers<[1], [1], [0], [0], [0, 0, 1, 0], [], []>, precision = #tpu.contract_precision<fp32>} : vector<8x256xf32>, vector<4x256xf32>, vector<8x4xf32> -> vector<8x4xf32>
    %c0_5 = arith.constant 0 : index
    %c0_6 = arith.constant 0 : index
    %7 = vector.load %arg9[%c0_5, %c0_6] : memref<8x1xf32, #tpu.memory_space<vmem>>, vector<8x1xf32>
    %8 = vector.broadcast %7 : vector<8x1xf32> to vector<8x4xf32>
    %9 = arith.mulf %6, %8 : vector<8x4xf32>
    %c0_7 = arith.constant 0 : index
    %c0_8 = arith.constant 0 : index
    %10 = vector.load %arg7[%c0_7, %c0_8] : memref<8x4xf32, #tpu.memory_space<vmem>>, vector<8x4xf32>
    tpu.vector_store %arg7[%c0_7, %c0_8], %9 {strides = array<i32>} : memref<8x4xf32, #tpu.memory_space<vmem>>, vector<8x4xf32>,
    return
  }
  func.func @transform_0(%arg0: i32, %arg1: i32, %arg2: memref<2xi32, #tpu.memory_space<smem>>) -> (i32, i32, i32) {
    %c0_i32 = arith.constant 0 : i32
    %c0_i32_0 = arith.constant 0 : i32
    %c0_i32_1 = arith.constant 0 : i32
    return %arg0, %c0_i32, %c0_i32_0 : i32, i32, i32
  }
  func.func @transform_1(%arg0: i32, %arg1: i32, %arg2: memref<2xi32, #tpu.memory_space<smem>>) -> (i32, i32) {
    %c0_i32 = arith.constant 0 : i32
    %c0_i32_0 = arith.constant 0 : i32
    %c0_i32_1 = arith.constant 0 : i32
    return %c0_i32, %c0_i32_0 : i32, i32
  }
  func.func @transform_2(%arg0: i32, %arg1: i32, %arg2: memref<2xi32, #tpu.memory_space<smem>>) -> (i32, i32, i32) {
    %0 = arith.index_cast %arg0 : i32 to index
    %1 = memref.load %arg2[%0] : memref<2xi32, #tpu.memory_space<smem>>
    %c0_i32 = arith.constant 0 : i32
    %c0_i32_0 = arith.constant 0 : i32
    return %1, %arg1, %c0_i32 : i32, i32, i32
  }
  func.func @transform_3(%arg0: i32, %arg1: i32, %arg2: memref<2xi32, #tpu.memory_space<smem>>) -> (i32, i32, i32) {
    %0 = arith.index_cast %arg0 : i32 to index
    %1 = memref.load %arg2[%0] : memref<2xi32, #tpu.memory_space<smem>>
    %c0_i32 = arith.constant 0 : i32
    %c0_i32_0 = arith.constant 0 : i32
    %c0_i32_1 = arith.constant 0 : i32
    return %1, %c0_i32, %c0_i32_0 : i32, i32, i32
  }
  func.func @transform_4(%arg0: i32, %arg1: i32, %arg2: memref<2xi32, #tpu.memory_space<smem>>) -> (i32, i32) {
    %c0_i32 = arith.constant 0 : i32
    return %arg0, %arg1 : i32, i32
  }
}

</mosaic_0001>

<bundles_post_ra>
// kernel: tpu_custom_call.1
= control target key start
LH: loop header
LB: loop body
LE: loop exit
PB: predicated region body
PF: predicated region fallthrough
CT: control target
= control target key end

     0   :  { %s1213_s0 = inlined_call_operand.vmem [shape: s32[2], index: 0, kind: input, shape index: {}]   ;;  %s1214_s1 = inlined_call_operand.vmem [shape: s32[2,8,4], index: 1, kind: input, shape index: {}]   ;;  %s1215_s2 = inlined_call_operand.vmem [shape: s32[2,256], index: 2, kind: input, shape index: {}]   ;;  %s1216_s3 = inlined_call_operand.vmem [shape: f32[2,4,256], index: 3, kind: input, shape index: {}]   ;;  %s1217_s4 = inlined_call_operand.vmem [shape: f32[2,1,256], index: 4, kind: input, shape index: {}]   ;;  %s1218_s5 = inlined_call_operand.vmem [shape: f32[16,4], index: 5, kind: output, shape index: {}]  }
   0x1   :  { %s10_s20 = sshll.u32 %s1213_s0, 4  ;;  %s11_s20 = int_to_ptr.vmem [resolvable:$true] %s10_s20 }
   0x2   :  { %s1038_s21 = scalar_lea.vmem %s11_s20, 16  ;;  %p1043_p1 = scmp.lt.s32.totalorder %s11_s20, %s11_s20 }
   0x3   :  { %p1039_p0 = scmp.ne.s32.totalorder %s11_s20, %s1038_s21  ;;  %p1044_p2 = scmp.lt.s32.totalorder %s1038_s21, %s1038_s21 }
   0x5   :  { %p1045_p3 = por %p1044_p2, %p1043_p1 }
   0x7   :  { %p1046_p4 = pnand %p1045_p3, %p1039_p0 }
   0x9   :  { %1049 = shalt.err (!%p1046_p4)  }
   0xa   :  { %s1076_s22 = smov [#allocation5]  }
   0xb   :  { %13 = dma.vmem_to_smem %s11_s20, 16, %s1076_s22, [#allocation4] }
   0xc   :  { %1062 = dma.done.wait [#allocation4], 16 }
   0xd   :  { %1063 = vsyncadd [#allocation4], 4294967280 }
   0xe   :  { %15 = sfence }
   0xf   :  { %s1114_s23 = smov 0   ;;  %s1116_s24 = smov 0  }
  0x10   :  { %s1118_s25 = smov 0  }
  0x11 LB: > { %s33_s0 = sadd.s32 1, %s1070_s24  ;;  %p979_p5 = scmp.ge.s32.totalorder %s1074_s25, 1  ;;  %s1074_s25 = sphi %s1118_s25, %s21_s25   ;;  %s1070_s24 = sphi %s1116_s24, %s1228_s24   ;;  %s1066_s23 = sphi %s1114_s23, %s1227_s23  }
  0x12   : > { %p35_p6 = scmp.ge.s32.totalorder %s33_s0, 2  ;;  %p215_p7 = scmp.lt.s32.totalorder %s1074_s25, 3 }
  0x14   : > { %s1230_s0 = smov (%p35_p6, %s33_s0), 0  ;;  %p216_p8 = pnand %p979_p5, %p215_p7 }
  0x15   : > { %p257_p9 = scmp.lt.s32.totalorder (!%p216_p8), %s1066_s23, 1  ;;  %v1077_v0 = vmov (!%p216_p8), 0   ;;  %v1078_v1 = vmov (!%p216_p8), 1   ;;  %v1079_v3 = vmov (!%p216_p8), 2   ;;  %v1080_v4 = vmov (!%p216_p8), 3   ;;  %s272_s6 = sld [smem:[#allocation5 + %s1066_s23]] (!%p216_p8) }
  0x16   : > { %219 = sbr.rel (%p216_p8) target bundleno = 632 (0x278), region = 36  ;;  %1028 = vset.pattern.permute.xlu1 (!%p216_p8), %v1077_v0  ;;  %1026 = vset.pattern.permute.xlu0 (!%p216_p8), %v1078_v1  ;;  %v291_v5 = vlaneseq (!%p216_p8)  ;;  %v290_v8 = vld [vmem:[%s1215_s2] sm:$0xf] (!%p216_p8)  ;;  %s261_s13 = sld [smem:[#allocation5 + %s1066_s23]] (!%p216_p8)  ;;  %vm382_vm15 = vcmask (!%p216_p8), 7168  }
  0x18   : > { %v292_v6 = vshrl.u32 (!%p216_p8), %v291_v5, 7 }
  0x1a   : > { %v321_v7 = vsub.s32 (!%p216_p8), 1, %v292_v6  ;;  %v325_v9 = vsub.s32 (!%p216_p8), 3, %v292_v6  ;;  %v293_v10 = vsub.s32 (!%p216_p8), 0, %v292_v6  ;;  %v297_v11 = vsub.s32 (!%p216_p8), 2, %v292_v6 }
  0x1b   : > { %p273_p10 = scmp.lt.s32.totalorder (!%p216_p8), %s272_s6, 1 }
  0x1c   : > { %v322_v12 = vrot.slane (!%p216_p8), %v290_v8, %v321_v7  ;;  %v326_v13 = vrot.slane (!%p216_p8), %v290_v8, %v325_v9  ;;  %v294_v15 = vrot.slane (!%p216_p8), %v290_v8, %v293_v10  ;;  %v298_v17 = vrot.slane (!%p216_p8), %v290_v8, %v297_v11  ;;  %p262_p11 = scmp.lt.s32.totalorder (!%p216_p8), %s261_s13, 1 }
  0x1d   : > { %s1136_s26 = scalar_select %p257_p9, %s1066_s23, 1 }
  0x1e   : > { %s1232_s6 = smov (!%p273_p10, %s272_s6), 1  ;;  %v330_v18 = vrot.slane %v322_v12, %v321_v7  ;;  %v334_v19 = vrot.slane %v326_v13, %v321_v7  ;;  %v302_v20 = vrot.slane %v294_v15, %v293_v10  ;;  %v306_v21 = vrot.slane %v298_v17, %v293_v10  ;;  %s1234_s13 = smov (!%p262_p11, %s261_s13), 1 }
  0x1f   : > { %s980_s27 = sshll.u32 %s1136_s26, 3  ;;  %s983_s9 = sshll.u32 %s1232_s6, 1 }
  0x20   : > { %s260_s30 = scalar_lea.vmem %s1214_s1, %s980_s27  ;;  %s276_s12 = scalar_lea.vmem %s1217_s4, %s983_s9 }
  0x21   : > { %v289_v2 = vld [vmem:[%s260_s30] sm:$0xff]  ;;  %s987_s14 = sshll.u32 %s1234_s13, 3  ;;  %s284_s20 = scalar_lea.vmem %s1218_s5, %s980_s27 }
  0x22   : > { %336 = vperm.xlu1 %1028, %v289_v2   ;;  %308 = vperm.xlu0 %1026, %v289_v2   ;;  %v349_v24 = vld [vmem:[%s276_s12] sm:$0x3]  ;;  %s270_s17 = scalar_lea.vmem %s1216_s3, %s987_s14 }
  0x23   : > { %v354_v27 = vrot.slane %v349_v24, %v293_v10  ;;  %v358_v29 = vrot.slane %v349_v24, %v321_v7  ;;  %v386_v34 = vld [vmem:[%s270_s17] sm:$0xff] }
  0x24   : > { %v388_v35 = vcombine.high %v386_v34, %v386_v34  ;;  %v392_v37 = vand.u32 4294901760, %v386_v34 }
  0x26   : > { %1029 = vset.pattern.permute.xlu1 %v1079_v3  ;;  %1027 = vset.pattern.permute.xlu0 %v1080_v4  ;;  %v390_v36 = vand.u32 4294901760, %v388_v35  ;;  %v479_v47 = vsub.f32 %v386_v34, %v392_v37 }
  0x27   : > { %341 = vperm.xlu1 %1029, %v289_v2   ;;  %313 = vperm.xlu0 %1027, %v289_v2  }
  0x28   : > { %633 = vmatprep.subr.mxu0 %v390_v36  ;;  %391 = vmatprep.subr.mxu1 %v390_v36  ;;  %v473_v38 = vsub.f32 %v388_v35, %v390_v36  ;;  %v480_v55 = vand.u32 4294901760, %v479_v47 }
  0x29   : > { %635 = vmatpush1.xpose.msra.mxu0 %v392_v37  ;;  %393 = vmatpush1.xpose.msra.mxu1 %v392_v37 }
  0x2a   : > { %v474_v39 = vand.u32 4294901760, %v473_v38  ;;  %v481_v60 = vsub.f32 %v479_v47, %v480_v55 }
  0x2b   : > { %1030 = vset.pattern.permute.xlu0 %v1077_v0 }
  0x2c   : > { %713 = vmatprep.subr.mxu0 %v474_v39  ;;  %v475_v40 = vsub.f32 %v473_v38, %v474_v39  ;;  %v482_v1 = vand.u32 4294901760, %v481_v60 }
  0x2e   : > { %v476_v41 = vand.u32 4294901760, %v475_v40 }
  0x30   : > { %477 = vmatprep.subr.mxu1 %v476_v41 }
  0xa1   : > { %v337_v14 = vpop.permute.xlu1 %336  ;;  %v309_v16 = vpop.permute.xlu0 %308 }
  0xa2   : > { %vm338_vm0 = vcmp.ge.s32.totalorder %v330_v18, %v337_v14  ;;  %vm339_vm4 = vcmp.ge.s32.totalorder %v334_v19, %v337_v14  ;;  %vm310_vm7 = vcmp.ge.s32.totalorder %v302_v20, %v309_v16  ;;  %vm311_vm9 = vcmp.ge.s32.totalorder %v306_v21, %v309_v16 }
  0xa6   : > { %v342_v22 = vpop.permute.xlu1 %341  ;;  %v314_v23 = vpop.permute.xlu0 %313 }
  0xa7   : > { %vm343_vm1 = vcmp.lt.s32.totalorder %v330_v18, %v342_v22  ;;  %vm344_vm2 = vcmp.lt.s32.totalorder %v334_v19, %v342_v22  ;;  %vm315_vm3 = vcmp.lt.s32.totalorder %v302_v20, %v314_v23  ;;  %vm316_vm6 = vcmp.lt.s32.totalorder %v306_v21, %v314_v23 }
  0xa8   : > { %vm1151_vm5 = vmand %vm338_vm0, %vm343_vm1  ;;  %vm869_vm0 = vcmask 31744  }
  0xa9   : > { %vm1155_vm8 = vmand %vm339_vm4, %vm344_vm2 }
  0xaa   : > { %vm1159_vm10 = vmand %vm310_vm7, %vm315_vm3 }
  0xab   : > { %vm1163_vm11 = vmand %vm311_vm9, %vm316_vm6 }
  0xac   : > { %vm347_vm12 = vmand %vm1159_vm10, %vm1151_vm5 }
  0xad   : > { %vm348_vm13 = vmand %vm1163_vm11, %vm1155_vm8  ;;  %v361_v31 = vsel %vm347_vm12, %v354_v27, -1e+30 }
  0xae   : > { %v362_v32 = vsel %vm348_vm13, %v358_v29, -1e+30 }
  0xaf   : > { %v363_v33 = vmax.f32 %v361_v31, %v362_v32 }
  0xb1   : > { %364 = vmax.xlane.f32.xlu1 %v363_v33 }
 0x13e   : > { %v365_v42 = vpop.xlane.xlu1 %364 }
 0x13f   : > { %v366_v43 = vsub.f32 %v361_v31, %v365_v42  ;;  %v367_v44 = vsub.f32 %v362_v32, %v365_v42 }
 0x141   : > { %v368_v45 = vmul.f32 1.442695, %v366_v43  ;;  %v370_v46 = vmul.f32 1.442695, %v367_v44 }
 0x143   : > { %1032 = vpow2.f32 %v368_v45 }
 0x144   : > { %1034 = vpow2.f32 %v370_v46 }
 0x14d   : > { %v1033_v48 = vpop.eup %1032 }
 0x14e   : > { %v1035_v49 = vpop.eup %1034  ;;  %v372_v50 = vsel %vm347_vm12, %v1033_v48, 0.0 }
 0x14f   : > { %v373_v51 = vsel %vm348_vm13, %v1035_v49, 0.0  ;;  %v462_v52 = vand.u32 4294901760, %v372_v50 }
 0x150   : > { %v374_v53 = vadd.f32 %v373_v51, %v372_v50  ;;  %v456_v54 = vand.u32 4294901760, %v373_v51 }
 0x151   : > { %v463_v56 = vsub.f32 %v372_v50, %v462_v52 }
 0x152   : > { %375 = vadd.xlane.f32.xlu0 %v374_v53  ;;  %v457_v57 = vsub.f32 %v373_v51, %v456_v54 }
 0x153   : > { %v464_v58 = vand.u32 4294901760, %v463_v56 }
 0x154   : > { %v458_v59 = vand.u32 4294901760, %v457_v57 }
 0x155   : > { %v465_v61 = vsub.f32 %v463_v56, %v464_v58 }
 0x156   : > { %701 = vmatprep.mubr.f32.mxu0 %v458_v59  ;;  %v459_v62 = vsub.f32 %v457_v57, %v458_v59 }
 0x157   : > { %705 = vmatmul.mubr.f32.vlgmr.msra.gmra.mrb[0].mxu0 %v464_v58  ;;  %v466_v63 = vand.u32 4294901760, %v465_v61 }
 0x158   : > { %781 = vmatprep.mubr.f32.mxu0 %v456_v54  ;;  %v460_v0 = vand.u32 4294901760, %v459_v62  ;;  %717 = vmatpush1.xpose.msra.mxu0 %v480_v55 }
 0x159   : > { %789 = vmatprep.subr.mxu0 %v390_v36 }
 0x15a   : > { %461 = vmatprep.mubr.f32.mxu1 %v460_v0 }
 0x15b   : > { %467 = vmatmul.mubr.f32.vlgmr.msra.gmra.mrb[0].mxu1 %v466_v63 }
 0x15c   : > { %547 = vmatprep.mubr.f32.mxu1 %v456_v54  ;;  %483 = vmatpush1.xpose.msra.mxu1 %v482_v1 }
 0x15d   : > { %556 = vmatprep.subr.mxu1 %v473_v38 }
 0x15f   : > { %783 = vmatmul.mubr.f32.vlgmr.msra.gmra.mrb[0].mxu0 %v462_v52 }
 0x160   : > { %855 = vmatprep.mubr.f32.mxu0 %v456_v54  ;;  %791 = vmatpush1.xpose.msra.mxu0 %v392_v37 }
 0x163   : > { %549 = vmatmul.mubr.f32.vlgmr.msra.gmra.mrb[0].mxu1 %v462_v52 }
 0x164   : > { %624 = vmatprep.mubr.f32.mxu1 %v457_v57  ;;  %559 = vmatpush1.xpose.msra.mxu1 %v479_v47 }
 0x167   : > { %857 = vmatmul.mubr.f32.vlgmr.msra.gmra.mrb[0].mxu0 %v462_v52 }
 0x16b   : > { %627 = vmatmul.mubr.f32.vlgmr.msra.gmra.mrb[0].mxu1 %v463_v56 }
 0x1df   : > { %v376_v2 = vpop.xlane.xlu0 %375 }
 0x1e0   : > { %vm377_vm14 = vcmp.gt.f32.partialorder %v376_v2, 0.0 }
 0x1e1   : > { %v378_v3 = vsel %vm377_vm14, %v376_v2, 1.0 }
 0x1e2   : > { %1036 = vrcp.f32 %v378_v3 }
 0x1ec   : > { %v1037_v4 = vpop.eup %1036 }
 0x1ed   : > { %383 = vst.msk [vmem:[#allocation3] sm:$0xff] %vm382_vm15, %v1037_v4 }
 0x1f4   : > { %v862_v5 = vld [vmem:[#allocation3] sm:$0xff] }
 0x1f5   : > { %865 = vperm.xlu0 %1030, %v862_v5  }
 0x23a   : > { %v858_v6 = vpop.f32.mrb[0].mxu0 }
 0x23b   : > { %v860_v7 = vpop.f32.mrb[1].mxu0 }
 0x23e   : > { %v628_v8 = vpop.f32.mrb[0].mxu1 }
 0x23f   : > { %v988_v9 = vadd.f32 %v858_v6, %v628_v8  ;;  %v630_v10 = vpop.f32.mrb[1].mxu1 }
 0x274   : > { %v866_v11 = vpop.permute.xlu0 %865 }
 0x275   : > { %v868_v12 = vmul.f32 %v988_v9, %v866_v11 }
 0x277   : > { %870 = vst.msk [vmem:[%s284_s20] sm:$0xff] %vm869_vm0, %v868_v12 }
 0x278 PF: > { %s21_s25 = sadd.s32 1, %s1074_s25   ;;  %s1227_s23 = smov %s1070_s24 }
 0x279   : > { %p18_p12 = scmp.ge.s32.totalorder %s21_s25, 4   ;;  %s1228_s24 = smov %s1230_s0 }
 0x27b   :  { %20 = sbr.rel (!%p18_p12) target bundleno = 17 (0x11), region = 76 }

</bundles_post_ra>
